<compile_context>
chip_gen: v7x
topology: tpu7x:2x2x1
jax: 0.10.0
libtpu: 0.0.40
codegen_flags: <defaults>
</compile_context>

<pallas_src>
import jax
import jax.numpy as jnp
from jax.experimental import pallas as pl
from jax.experimental.pallas import tpu as pltpu


def _make_kernel(H, W, pad):
    HW = H * W

    def kernel(x1_ref, x2_ref, w1_ref, b1_ref, w2_ref, b2_ref, w3_ref, b3_ref,
               o_ref):
        # x1_ref/x2_ref: (1, Cin, HW)  f32      (one batch element, NCHW-flat)
        # w1_ref: (C1, 9*C2) bf16   b1_ref: (C1, 1) f32
        # w2_ref: (C1, 9*C1) bf16   b2_ref: (C1, 1) f32
        # w3_ref: (Co, C1)   bf16   b3_ref: (Co, 1) f32
        # o_ref : (1, Co, HW) f32

        # lane-position -> x-coordinate masks for the horizontal conv taps
        col = jax.lax.broadcasted_iota(jnp.int32, (1, HW), 1)
        if (W & (W - 1)) == 0:
            xcoord = jnp.bitwise_and(col, W - 1)
        else:
            xcoord = col % W
        mask_l = xcoord >= 1          # lanes where the dx = -1 tap is valid
        mask_r = xcoord <= W - 2      # lanes where the dx = +1 tap is valid

        def im2col_3x3(x):
            # x: (C, HW) bf16 -> (9*C, HW): 9 shifted/masked copies stacked
            # along sublanes (tap-major, channel-minor) for one MXU matmul.
            C = x.shape[0]
            ml = jnp.broadcast_to(mask_l, (C, HW))    # hoisted broadcasts
            mr = jnp.broadcast_to(mask_r, (C, HW))
            z = jnp.zeros((C, pad), dtype=x.dtype)
            xp = jnp.concatenate([z, x, z], axis=1)   # (C, HW + 2*pad)
            taps = []
            for dy in (-1, 0, 1):
                for dx in (-1, 0, 1):
                    s = dy * W + dx
                    win = xp[:, pad + s: pad + s + HW]   # static lane slice
                    if dx == -1:
                        win = jnp.where(ml, win, jnp.zeros_like(win))
                    elif dx == 1:
                        win = jnp.where(mr, win, jnp.zeros_like(win))
                    taps.append(win)
            return jnp.concatenate(taps, axis=0)

        # torch.cat([x2, x1], dim=1) done in-kernel (small sublane concat).
        x = jnp.concatenate([x2_ref[0], x1_ref[0]], axis=0).astype(jnp.bfloat16)

        # conv1: 3x3 pad=1, C2 -> C1, ReLU   (single matmul, K = 9*C2)
        acc1 = jnp.dot(w1_ref[...], im2col_3x3(x),
                       preferred_element_type=jnp.float32)        # (C1, HW)
        h1 = jnp.maximum(acc1 + b1_ref[...], 0.0)

        # conv2: 3x3 pad=1, C1 -> C1, ReLU   (single matmul, K = 9*C1)
        acc2 = jnp.dot(w2_ref[...], im2col_3x3(h1.astype(jnp.bfloat16)),
                       preferred_element_type=jnp.float32)        # (C1, HW)
        h2 = jnp.maximum(acc2 + b2_ref[...], 0.0)

        # conv3: 1x1, C1 -> Co
        out = jnp.dot(w3_ref[...], h2.astype(jnp.bfloat16),
                      preferred_element_type=jnp.float32) + b3_ref[...]
        o_ref[0] = out.astype(o_ref.dtype)                        # (Co, HW)

    return kernel


def output_block(x1, x2, params):
    """x1, x2: (B, Cin, H, W) NCHW (PyTorch convention). Returns (B, Cout, H, W)."""
    w1, b1, w2, b2, w3, b3 = params
    B, Cin, H, W = x1.shape
    C2 = 2 * Cin
    C1 = w1.shape[3]
    Co = w3.shape[1]
    HW = H * W
    pad = 128  # lane zero-padding; needs only >= W+1, 128 keeps widths tidy

    # Free reshapes only: NCHW -> (B, C, H*W). No transposes, no HBM concat.
    x1f = x1.reshape(B, Cin, HW).astype(jnp.float32)
    x2f = x2.reshape(B, Cin, HW).astype(jnp.float32)

    # Weights -> (Cout, 9*Cin) rows in tap-major / channel-minor order
    # (matching the in-kernel im2col), bf16 for the MXU. Biases -> (C, 1).
    w1k = jnp.transpose(w1, (3, 0, 1, 2)).reshape(C1, 9 * C2).astype(jnp.bfloat16)
    w2k = jnp.transpose(w2, (3, 0, 1, 2)).reshape(C1, 9 * C1).astype(jnp.bfloat16)
    w3k = jnp.transpose(w3, (1, 0)).astype(jnp.bfloat16)
    b1k = b1.reshape(C1, 1).astype(jnp.float32)
    b2k = b2.reshape(C1, 1).astype(jnp.float32)
    b3k = b3.reshape(Co, 1).astype(jnp.float32)

    kernel = _make_kernel(H, W, pad)

    # TODO(synk): for large H*W, tile the spatial axis (grid over row blocks
    # with a 1-row halo) so per-step VMEM stays under v7x's 64 MiB and the
    # grid has enough parallel steps to feed both v7x TensorCores.
    out = pl.pallas_call(
        kernel,
        out_shape=jax.ShapeDtypeStruct((B, Co, HW), jnp.float32),
        grid_spec=pltpu.PrefetchScalarGridSpec(
            num_scalar_prefetch=0,
            grid=(B,),
            in_specs=[
                pl.BlockSpec((1, Cin, HW), lambda b: (b, 0, 0)),
                pl.BlockSpec((1, Cin, HW), lambda b: (b, 0, 0)),
                pl.BlockSpec((C1, 9 * C2), lambda b: (0, 0)),
                pl.BlockSpec((C1, 1), lambda b: (0, 0)),
                pl.BlockSpec((C1, 9 * C1), lambda b: (0, 0)),
                pl.BlockSpec((C1, 1), lambda b: (0, 0)),
                pl.BlockSpec((Co, C1), lambda b: (0, 0)),
                pl.BlockSpec((Co, 1), lambda b: (0, 0)),
            ],
            out_specs=pl.BlockSpec((1, Co, HW), lambda b: (b, 0, 0)),
        ),
        compiler_params=pltpu.CompilerParams(
            dimension_semantics=("parallel",)),
    )(x1f, x2f, w1k, b1k, w2k, b2k, w3k, b3k)

    return out.reshape(B, Co, H, W)   # free reshape; already NCHW order


def make_params(key, in_channels, out_channels):
    """Deterministic synthetic parameters matching OutputBlock's shapes (HWIO)."""
    C2, C1, Co = 2 * in_channels, in_channels, out_channels
    k = jax.random.split(key, 6)
    w1 = 0.1 * jax.random.normal(k[0], (3, 3, C2, C1), jnp.float32)
    b1 = 0.1 * jax.random.normal(k[1], (1, C1), jnp.float32)
    w2 = 0.1 * jax.random.normal(k[2], (3, 3, C1, C1), jnp.float32)
    b2 = 0.1 * jax.random.normal(k[3], (1, C1), jnp.float32)
    w3 = 0.1 * jax.random.normal(k[4], (C1, Co), jnp.float32)
    b3 = 0.1 * jax.random.normal(k[5], (1, Co), jnp.float32)
    return (w1, b1, w2, b2, w3, b3)


def reference_forward(x1, x2, params):
    """Pure-JAX reference of OutputBlock.forward (for correctness check)."""
    w1, b1, w2, b2, w3, b3 = params
    x = jnp.concatenate([x2, x1], axis=1)
    x = jnp.transpose(x, (0, 2, 3, 1))
    dn = ('NHWC', 'HWIO', 'NHWC')
    y = jax.lax.conv_general_dilated(x, w1, (1, 1), 'SAME',
                                     dimension_numbers=dn) + b1[0]
    y = jax.nn.relu(y)
    y = jax.lax.conv_general_dilated(y, w2, (1, 1), 'SAME',
                                     dimension_numbers=dn) + b2[0]
    y = jax.nn.relu(y)
    y = jnp.einsum('bhwc,co->bhwo', y, w3) + b3[0]
    return jnp.transpose(y, (0, 3, 1, 2))


if __name__ == "__main__":
    B, Cin, Cout, H, W = 2, 4, 3, 16, 16

    key = jax.random.PRNGKey(0)
    k1, k2, kp = jax.random.split(key, 3)
    x1 = jax.random.normal(k1, (B, Cin, H, W), jnp.float32)
    x2 = jax.random.normal(k2, (B, Cin, H, W), jnp.float32)
    params = make_params(kp, Cin, Cout)

    out = jax.block_until_ready(output_block(x1, x2, params))
    ref = jax.block_until_ready(reference_forward(x1, x2, params))

    assert out.shape == (B, Cout, H, W), out.shape
    # MXU operands are bf16 (f32 accumulation), so tolerance is loosened vs
    # the pure-f32 reference; any structural bug would be O(1) off, far above.
    assert jnp.allclose(out, ref, atol=5e-2, rtol=5e-2), \
        float(jnp.max(jnp.abs(out - ref)))

    print("KERNEL_OK")
</pallas_src>

<mosaic_0001>
module attributes {stable_mosaic.version = 11 : i64} {
  func.func @kernel(%arg0: i32, %arg1: memref<1x4x256xf32, #tpu.memory_space<vmem>>, %arg2: memref<1x4x256xf32, #tpu.memory_space<vmem>>, %arg3: memref<4x72xbf16, #tpu.memory_space<vmem>>, %arg4: memref<4x1xf32, #tpu.memory_space<vmem>>, %arg5: memref<4x36xbf16, #tpu.memory_space<vmem>>, %arg6: memref<4x1xf32, #tpu.memory_space<vmem>>, %arg7: memref<3x4xbf16, #tpu.memory_space<vmem>>, %arg8: memref<3x1xf32, #tpu.memory_space<vmem>>, %arg9: memref<1x3x256xf32, #tpu.memory_space<vmem>>) attributes {dimension_semantics = [#tpu.dimension_semantics<parallel>], iteration_bounds = array<i64: 2>, scalar_prefetch = 0 : i64, scratch_operands = 0 : i64, tpu.core_type = #tpu.core_type<tc>, window_params = [{transform_indices = @transform_0, window_bounds = array<i64: 1, 4, 256>}, {transform_indices = @transform_1, window_bounds = array<i64: 1, 4, 256>}, {pipeline_mode = #tpu.pipeline_mode<synchronous>, transform_indices = @transform_2, window_bounds = array<i64: 4, 72>}, {pipeline_mode = #tpu.pipeline_mode<synchronous>, transform_indices = @transform_3, window_bounds = array<i64: 4, 1>}, {pipeline_mode = #tpu.pipeline_mode<synchronous>, transform_indices = @transform_4, window_bounds = array<i64: 4, 36>}, {pipeline_mode = #tpu.pipeline_mode<synchronous>, transform_indices = @transform_5, window_bounds = array<i64: 4, 1>}, {pipeline_mode = #tpu.pipeline_mode<synchronous>, transform_indices = @transform_6, window_bounds = array<i64: 3, 4>}, {pipeline_mode = #tpu.pipeline_mode<synchronous>, transform_indices = @transform_7, window_bounds = array<i64: 3, 1>}, {transform_indices = @transform_8, window_bounds = array<i64: 1, 3, 256>}]} {
    %0 = tpu.iota {dimensions = array<i32: 1>} : vector<1x256xi32>
    %c15_i32 = arith.constant 15 : i32
    %1 = vector.broadcast %c15_i32 : i32 to vector<1x256xi32>
    %2 = arith.andi %0, %1 : vector<1x256xi32>
    %c1_i32 = arith.constant 1 : i32
    %3 = vector.broadcast %c1_i32 : i32 to vector<1x256xi32>
    %4 = arith.cmpi sge, %2, %3 : vector<1x256xi32>
    %c14_i32 = arith.constant 14 : i32
    %5 = vector.broadcast %c14_i32 : i32 to vector<1x256xi32>
    %6 = arith.cmpi sle, %2, %5 : vector<1x256xi32>
    %c0 = arith.constant 0 : index
    %c0_0 = arith.constant 0 : index
    %c0_1 = arith.constant 0 : index
    %7 = vector.load %arg2[%c0, %c0_0, %c0_1] : memref<1x4x256xf32, #tpu.memory_space<vmem>>, vector<1x4x256xf32>
    %8 = vector.shape_cast %7 : vector<1x4x256xf32> to vector<4x256xf32>
    %c0_2 = arith.constant 0 : index
    %c0_3 = arith.constant 0 : index
    %c0_4 = arith.constant 0 : index
    %9 = vector.load %arg1[%c0_2, %c0_3, %c0_4] : memref<1x4x256xf32, #tpu.memory_space<vmem>>, vector<1x4x256xf32>
    %10 = vector.shape_cast %9 : vector<1x4x256xf32> to vector<4x256xf32>
    %11 = tpu.concatenate %8, %10 in 0 : vector<4x256xf32>, vector<4x256xf32> -> vector<8x256xf32>
    %12 = arith.truncf %11 : vector<8x256xf32> to vector<8x256xbf16>
    %c0_5 = arith.constant 0 : index
    %c0_6 = arith.constant 0 : index
    %13 = vector.load %arg3[%c0_5, %c0_6] : memref<4x72xbf16, #tpu.memory_space<vmem>>, vector<4x72xbf16>
    %14 = vector.shape_cast %4 : vector<1x256xi1> to vector<1x256xi1>
    %15 = vector.broadcast %14 : vector<1x256xi1> to vector<8x256xi1>
    %16 = vector.shape_cast %6 : vector<1x256xi1> to vector<1x256xi1>
    %17 = vector.broadcast %16 : vector<1x256xi1> to vector<8x256xi1>
    %cst = arith.constant 0.000000e+00 : bf16
    %18 = vector.broadcast %cst : bf16 to vector<8x128xbf16>
    %19 = tpu.concatenate %18, %12, %18 in 1 : vector<8x128xbf16>, vector<8x256xbf16>, vector<8x128xbf16> -> vector<8x512xbf16>
    %20 = vector.extract_strided_slice %19 {offsets = [0, 111], sizes = [8, 256], strides = [1, 1]} : vector<8x512xbf16> to vector<8x256xbf16>
    %cst_7 = arith.constant 0.000000e+00 : bf16
    %21 = vector.broadcast %cst_7 : bf16 to vector<8x256xbf16>
    %22 = arith.select %15, %20, %21 : vector<8x256xi1>, vector<8x256xbf16>
    %23 = vector.extract_strided_slice %19 {offsets = [0, 112], sizes = [8, 256], strides = [1, 1]} : vector<8x512xbf16> to vector<8x256xbf16>
    %24 = vector.extract_strided_slice %19 {offsets = [0, 113], sizes = [8, 256], strides = [1, 1]} : vector<8x512xbf16> to vector<8x256xbf16>
    %cst_8 = arith.constant 0.000000e+00 : bf16
    %25 = vector.broadcast %cst_8 : bf16 to vector<8x256xbf16>
    %26 = arith.select %17, %24, %25 : vector<8x256xi1>, vector<8x256xbf16>
    %27 = vector.extract_strided_slice %19 {offsets = [0, 127], sizes = [8, 256], strides = [1, 1]} : vector<8x512xbf16> to vector<8x256xbf16>
    %cst_9 = arith.constant 0.000000e+00 : bf16
    %28 = vector.broadcast %cst_9 : bf16 to vector<8x256xbf16>
    %29 = arith.select %15, %27, %28 : vector<8x256xi1>, vector<8x256xbf16>
    %30 = vector.extract_strided_slice %19 {offsets = [0, 128], sizes = [8, 256], strides = [1, 1]} : vector<8x512xbf16> to vector<8x256xbf16>
    %31 = vector.extract_strided_slice %19 {offsets = [0, 129], sizes = [8, 256], strides = [1, 1]} : vector<8x512xbf16> to vector<8x256xbf16>
    %cst_10 = arith.constant 0.000000e+00 : bf16
    %32 = vector.broadcast %cst_10 : bf16 to vector<8x256xbf16>
    %33 = arith.select %17, %31, %32 : vector<8x256xi1>, vector<8x256xbf16>
    %34 = vector.extract_strided_slice %19 {offsets = [0, 143], sizes = [8, 256], strides = [1, 1]} : vector<8x512xbf16> to vector<8x256xbf16>
    %cst_11 = arith.constant 0.000000e+00 : bf16
    %35 = vector.broadcast %cst_11 : bf16 to vector<8x256xbf16>
    %36 = arith.select %15, %34, %35 : vector<8x256xi1>, vector<8x256xbf16>
    %37 = vector.extract_strided_slice %19 {offsets = [0, 144], sizes = [8, 256], strides = [1, 1]} : vector<8x512xbf16> to vector<8x256xbf16>
    %38 = vector.extract_strided_slice %19 {offsets = [0, 145], sizes = [8, 256], strides = [1, 1]} : vector<8x512xbf16> to vector<8x256xbf16>
    %cst_12 = arith.constant 0.000000e+00 : bf16
    %39 = vector.broadcast %cst_12 : bf16 to vector<8x256xbf16>
    %40 = arith.select %17, %38, %39 : vector<8x256xi1>, vector<8x256xbf16>
    %41 = tpu.concatenate %22, %23, %26, %29, %30, %33, %36, %37, %40 in 0 : vector<8x256xbf16>, vector<8x256xbf16>, vector<8x256xbf16>, vector<8x256xbf16>, vector<8x256xbf16>, vector<8x256xbf16>, vector<8x256xbf16>, vector<8x256xbf16>, vector<8x256xbf16> -> vector<72x256xbf16>
    %cst_13 = arith.constant dense<0.000000e+00> : vector<4x256xf32>
    %42 = tpu.matmul %13, %41, %cst_13 {dimension_numbers = #tpu.dot_dimension_numbers<[1], [0], [0], [1], [0, 0, 1, 1], [], []>} : vector<4x72xbf16>, vector<72x256xbf16>, vector<4x256xf32> -> vector<4x256xf32>
    %c0_14 = arith.constant 0 : index
    %c0_15 = arith.constant 0 : index
    %43 = vector.load %arg4[%c0_14, %c0_15] : memref<4x1xf32, #tpu.memory_space<vmem>>, vector<4x1xf32>
    %44 = vector.broadcast %43 : vector<4x1xf32> to vector<4x256xf32>
    %45 = arith.addf %42, %44 : vector<4x256xf32>
    %cst_16 = arith.constant 0.000000e+00 : f32
    %46 = vector.broadcast %cst_16 : f32 to vector<4x256xf32>
    %47 = arith.maximumf %45, %46 : vector<4x256xf32>
    %c0_17 = arith.constant 0 : index
    %c0_18 = arith.constant 0 : index
    %48 = vector.load %arg5[%c0_17, %c0_18] : memref<4x36xbf16, #tpu.memory_space<vmem>>, vector<4x36xbf16>
    %49 = arith.truncf %47 : vector<4x256xf32> to vector<4x256xbf16>
    %50 = vector.shape_cast %4 : vector<1x256xi1> to vector<1x256xi1>
    %51 = vector.broadcast %50 : vector<1x256xi1> to vector<4x256xi1>
    %52 = vector.shape_cast %6 : vector<1x256xi1> to vector<1x256xi1>
    %53 = vector.broadcast %52 : vector<1x256xi1> to vector<4x256xi1>
    %cst_19 = arith.constant 0.000000e+00 : bf16
    %54 = vector.broadcast %cst_19 : bf16 to vector<4x128xbf16>
    %55 = tpu.concatenate %54, %49, %54 in 1 : vector<4x128xbf16>, vector<4x256xbf16>, vector<4x128xbf16> -> vector<4x512xbf16>
    %56 = vector.extract_strided_slice %55 {offsets = [0, 111], sizes = [4, 256], strides = [1, 1]} : vector<4x512xbf16> to vector<4x256xbf16>
    %cst_20 = arith.constant 0.000000e+00 : bf16
    %57 = vector.broadcast %cst_20 : bf16 to vector<4x256xbf16>
    %58 = arith.select %51, %56, %57 : vector<4x256xi1>, vector<4x256xbf16>
    %59 = vector.extract_strided_slice %55 {offsets = [0, 112], sizes = [4, 256], strides = [1, 1]} : vector<4x512xbf16> to vector<4x256xbf16>
    %60 = vector.extract_strided_slice %55 {offsets = [0, 113], sizes = [4, 256], strides = [1, 1]} : vector<4x512xbf16> to vector<4x256xbf16>
    %cst_21 = arith.constant 0.000000e+00 : bf16
    %61 = vector.broadcast %cst_21 : bf16 to vector<4x256xbf16>
    %62 = arith.select %53, %60, %61 : vector<4x256xi1>, vector<4x256xbf16>
    %63 = vector.extract_strided_slice %55 {offsets = [0, 127], sizes = [4, 256], strides = [1, 1]} : vector<4x512xbf16> to vector<4x256xbf16>
    %cst_22 = arith.constant 0.000000e+00 : bf16
    %64 = vector.broadcast %cst_22 : bf16 to vector<4x256xbf16>
    %65 = arith.select %51, %63, %64 : vector<4x256xi1>, vector<4x256xbf16>
    %66 = vector.extract_strided_slice %55 {offsets = [0, 128], sizes = [4, 256], strides = [1, 1]} : vector<4x512xbf16> to vector<4x256xbf16>
    %67 = vector.extract_strided_slice %55 {offsets = [0, 129], sizes = [4, 256], strides = [1, 1]} : vector<4x512xbf16> to vector<4x256xbf16>
    %cst_23 = arith.constant 0.000000e+00 : bf16
    %68 = vector.broadcast %cst_23 : bf16 to vector<4x256xbf16>
    %69 = arith.select %53, %67, %68 : vector<4x256xi1>, vector<4x256xbf16>
    %70 = vector.extract_strided_slice %55 {offsets = [0, 143], sizes = [4, 256], strides = [1, 1]} : vector<4x512xbf16> to vector<4x256xbf16>
    %cst_24 = arith.constant 0.000000e+00 : bf16
    %71 = vector.broadcast %cst_24 : bf16 to vector<4x256xbf16>
    %72 = arith.select %51, %70, %71 : vector<4x256xi1>, vector<4x256xbf16>
    %73 = vector.extract_strided_slice %55 {offsets = [0, 144], sizes = [4, 256], strides = [1, 1]} : vector<4x512xbf16> to vector<4x256xbf16>
    %74 = vector.extract_strided_slice %55 {offsets = [0, 145], sizes = [4, 256], strides = [1, 1]} : vector<4x512xbf16> to vector<4x256xbf16>
    %cst_25 = arith.constant 0.000000e+00 : bf16
    %75 = vector.broadcast %cst_25 : bf16 to vector<4x256xbf16>
    %76 = arith.select %53, %74, %75 : vector<4x256xi1>, vector<4x256xbf16>
    %77 = tpu.concatenate %58, %59, %62, %65, %66, %69, %72, %73, %76 in 0 : vector<4x256xbf16>, vector<4x256xbf16>, vector<4x256xbf16>, vector<4x256xbf16>, vector<4x256xbf16>, vector<4x256xbf16>, vector<4x256xbf16>, vector<4x256xbf16>, vector<4x256xbf16> -> vector<36x256xbf16>
    %cst_26 = arith.constant dense<0.000000e+00> : vector<4x256xf32>
    %78 = tpu.matmul %48, %77, %cst_26 {dimension_numbers = #tpu.dot_dimension_numbers<[1], [0], [0], [1], [0, 0, 1, 1], [], []>} : vector<4x36xbf16>, vector<36x256xbf16>, vector<4x256xf32> -> vector<4x256xf32>
    %c0_27 = arith.constant 0 : index
    %c0_28 = arith.constant 0 : index
    %79 = vector.load %arg6[%c0_27, %c0_28] : memref<4x1xf32, #tpu.memory_space<vmem>>, vector<4x1xf32>
    %80 = vector.broadcast %79 : vector<4x1xf32> to vector<4x256xf32>
    %81 = arith.addf %78, %80 : vector<4x256xf32>
    %cst_29 = arith.constant 0.000000e+00 : f32
    %82 = vector.broadcast %cst_29 : f32 to vector<4x256xf32>
    %83 = arith.maximumf %81, %82 : vector<4x256xf32>
    %c0_30 = arith.constant 0 : index
    %c0_31 = arith.constant 0 : index
    %84 = vector.load %arg7[%c0_30, %c0_31] : memref<3x4xbf16, #tpu.memory_space<vmem>>, vector<3x4xbf16>
    %85 = arith.truncf %83 : vector<4x256xf32> to vector<4x256xbf16>
    %cst_32 = arith.constant dense<0.000000e+00> : vector<3x256xf32>
    %86 = tpu.matmul %84, %85, %cst_32 {dimension_numbers = #tpu.dot_dimension_numbers<[1], [0], [0], [1], [0, 0, 1, 1], [], []>} : vector<3x4xbf16>, vector<4x256xbf16>, vector<3x256xf32> -> vector<3x256xf32>
    %c0_33 = arith.constant 0 : index
    %c0_34 = arith.constant 0 : index
    %87 = vector.load %arg8[%c0_33, %c0_34] : memref<3x1xf32, #tpu.memory_space<vmem>>, vector<3x1xf32>
    %88 = vector.broadcast %87 : vector<3x1xf32> to vector<3x256xf32>
    %89 = arith.addf %86, %88 : vector<3x256xf32>
    %c0_35 = arith.constant 0 : index
    %c0_36 = arith.constant 0 : index
    %c0_37 = arith.constant 0 : index
    %90 = vector.load %arg9[%c0_35, %c0_36, %c0_37] : memref<1x3x256xf32, #tpu.memory_space<vmem>>, vector<1x3x256xf32>
    %91 = vector.shape_cast %90 : vector<1x3x256xf32> to vector<3x256xf32>
    %92 = vector.shape_cast %89 : vector<3x256xf32> to vector<1x3x256xf32>
    tpu.vector_store %arg9[%c0_35, %c0_36, %c0_37], %92 {strides = array<i32>} : memref<1x3x256xf32, #tpu.memory_space<vmem>>, vector<1x3x256xf32>,
    return
  }
  func.func @transform_0(%arg0: i32) -> (i32, i32, i32) {
    %c0_i32 = arith.constant 0 : i32
    %c0_i32_0 = arith.constant 0 : i32
    %c0_i32_1 = arith.constant 0 : i32
    return %arg0, %c0_i32, %c0_i32_0 : i32, i32, i32
  }
  func.func @transform_1(%arg0: i32) -> (i32, i32, i32) {
    %c0_i32 = arith.constant 0 : i32
    %c0_i32_0 = arith.constant 0 : i32
    %c0_i32_1 = arith.constant 0 : i32
    return %arg0, %c0_i32, %c0_i32_0 : i32, i32, i32
  }
  func.func @transform_2(%arg0: i32) -> (i32, i32) {
    %c0_i32 = arith.constant 0 : i32
    %c0_i32_0 = arith.constant 0 : i32
    %c0_i32_1 = arith.constant 0 : i32
    return %c0_i32, %c0_i32_0 : i32, i32
  }
  func.func @transform_3(%arg0: i32) -> (i32, i32) {
    %c0_i32 = arith.constant 0 : i32
    %c0_i32_0 = arith.constant 0 : i32
    %c0_i32_1 = arith.constant 0 : i32
    return %c0_i32, %c0_i32_0 : i32, i32
  }
  func.func @transform_4(%arg0: i32) -> (i32, i32) {
    %c0_i32 = arith.constant 0 : i32
    %c0_i32_0 = arith.constant 0 : i32
    %c0_i32_1 = arith.constant 0 : i32
    return %c0_i32, %c0_i32_0 : i32, i32
  }
  func.func @transform_5(%arg0: i32) -> (i32, i32) {
    %c0_i32 = arith.constant 0 : i32
    %c0_i32_0 = arith.constant 0 : i32
    %c0_i32_1 = arith.constant 0 : i32
    return %c0_i32, %c0_i32_0 : i32, i32
  }
  func.func @transform_6(%arg0: i32) -> (i32, i32) {
    %c0_i32 = arith.constant 0 : i32
    %c0_i32_0 = arith.constant 0 : i32
    %c0_i32_1 = arith.constant 0 : i32
    return %c0_i32, %c0_i32_0 : i32, i32
  }
  func.func @transform_7(%arg0: i32) -> (i32, i32) {
    %c0_i32 = arith.constant 0 : i32
    %c0_i32_0 = arith.constant 0 : i32
    %c0_i32_1 = arith.constant 0 : i32
    return %c0_i32, %c0_i32_0 : i32, i32
  }
  func.func @transform_8(%arg0: i32) -> (i32, i32, i32) {
    %c0_i32 = arith.constant 0 : i32
    %c0_i32_0 = arith.constant 0 : i32
    %c0_i32_1 = arith.constant 0 : i32
    return %arg0, %c0_i32, %c0_i32_0 : i32, i32, i32
  }
}

</mosaic_0001>

<bundles_post_ra>
// kernel: tpu_custom_call.1
= control target key start
LH: loop header
LB: loop body
LE: loop exit
PB: predicated region body
PF: predicated region fallthrough
CT: control target
= control target key end

     0   :  { %13 = vsyncpa [#allocation3], 0  ;;  %s1744_s0 = inlined_call_operand.hbm [shape: f32[2,4,256], index: 0, kind: input, shape index: {}]   ;;  %s1745_s1 = inlined_call_operand.vmem [shape: f32[2,4,256], index: 1, kind: input, shape index: {}]   ;;  %s1746_s2 = inlined_call_operand.vmem [shape: bf16[4,72], index: 2, kind: input, shape index: {}]   ;;  %s1747_s3 = inlined_call_operand.vmem [shape: f32[4,1], index: 3, kind: input, shape index: {}]   ;;  %s1748_s4 = inlined_call_operand.vmem [shape: bf16[4,36], index: 4, kind: input, shape index: {}]   ;;  %s1749_s5 = inlined_call_operand.vmem [shape: f32[4,1], index: 5, kind: input, shape index: {}]   ;;  %s1750_s6 = inlined_call_operand.vmem [shape: bf16[3,4], index: 6, kind: input, shape index: {}]   ;;  %s1751_s7 = inlined_call_operand.vmem [shape: f32[3,1], index: 7, kind: input, shape index: {}]   ;;  %s1752_s8 = inlined_call_operand.vmem [shape: f32[2,3,256], index: 8, kind: output, shape index: {}]  }
   0x1   :  { %15 = vsyncpa [#allocation3 + $0x1], 0  ;;  %s1284_s27 = smov 0   ;;  %s1286_s28 = smov 0  }
   0x2   :  { %s1288_s29 = smov 0   ;;  %s1290_s30 = smov 0  }
   0x3 LB: > { %s1303_s9 = sadd.s32 4294967295, %s1223_s30   ;;  %s1306_s10 = sadd.s32 1, %s1223_s30   ;;  %s1223_s30 = sphi %s1290_s30, %s1777_s30   ;;  %s1219_s29 = sphi %s1288_s29, %s1776_s29   ;;  %s1215_s28 = sphi %s1286_s28, %s1775_s28   ;;  %s1211_s27 = sphi %s1284_s27, %s1774_s27  }
   0x4   : > { %s25_s11 = ssub.s32 %s1223_s30, %s1306_s10  ;;  %s28_s12 = sadd.s32 1, %s1219_s29 }
   0x5   : > { %p26_p0 = scmp.eq.s32.totalorder %s25_s11, 0  ;;  %p35_p1 = scmp.ne.s32.totalorder %s1219_s29, %s1215_s28 }
   0x6   : > { %p36_p2 = scmp.eq.s32.totalorder %s1223_s30, 0  ;;  %p41_p3 = scmp.ne.s32.totalorder %s1215_s28, %s1211_s27 }
   0x7   : > { %s1316_s13 = scalar_select %p26_p0, %s1219_s29, %s28_s12  }
   0x8   : > { %p37_p4 = por %p36_p2, %p35_p1  ;;  %p42_p5 = scmp.eq.s32.totalorder %s1303_s9, 0 }
   0x9   : > { %p1109_p6 = scmp.lt.s32.totalorder %s1223_s30, 2  ;;  %s261_s15 = sand.u32 1, %s1219_s29  }
   0xa   : > { %p1320_p7 = por %p42_p5, %p41_p3  ;;  %s1083_s16 = sshll.u32 %s261_s15, 3 }
   0xb   : > { %s1100_s17 = sshll.u32 %s1223_s30, 7  ;;  %s265_s21 = scalar_lea.vmem [#allocation2], %s1083_s16 }
   0xc   : > { %s1329_s20 = scalar_lea.hbm %s1744_s0, %s1100_s17  ;;  %s273_s22 = sshll.u32 %s265_s21, 4  ;;  %s1331_s22 = int_to_ptr.vmem [resolvable:$true] %s273_s22 }
   0xd   : > { %p1333_p8 = pnand %p1109_p6, %p37_p4  ;;  %s262_s24 = scalar_lea.sflag [#allocation3], %s261_s15 }
   0xe   : > { %s1159_s25 = scalar_lea.hbm %s1329_s20, 128  ;;  %s1164_s11 = scalar_lea.hbm %s1744_s0, 256 }
   0xf   : > { %p1160_p11 = scmp.ne.s32.totalorder %s1329_s20, %s1159_s25  ;;  %p1161_p12 = pneg %p1333_p8 }
  0x10   : > { %p1165_p1 = scmp.lt.u32.totalorder %s1329_s20, %s1744_s0  ;;  %p1166_p2 = scmp.lt.u32.totalorder %s1164_s11, %s1159_s25 }
  0x11   : > { %p1162_p13 = pnand %p1161_p12, %p1160_p11  ;;  %p1168_p4 = scmp.lt.u32.totalorder %s1159_s25, %s1329_s20 }
  0x12   : > { %p1167_p3 = por %p1166_p2, %p1165_p1 }
  0x13   : > { %p1163_p0 = pneg %p1162_p13 }
  0x14   : > { %p1169_p5 = por %p1168_p4, %p1167_p3 }
  0x16   : > { %p1170_p6 = pnand %p1169_p5, %p1163_p0 }
  0x18   : > { %1173 = shalt.err (!%p1170_p6)
}
  0x19   : > { %s1174_s15 = scalar_lea.vmem %s1331_s22, 128  ;;  %s1225_s17 = smov [#allocation2]  }
  0x1a   : > { %p1175_p11 = scmp.ne.s32.totalorder %s1331_s22, %s1174_s15  ;;  %s1179_s18 = sshll.u32 %s1225_s17, 4  ;;  %s1180_s18 = int_to_ptr.vmem [resolvable:$false] %s1179_s18 }
  0x1b   : > { %s1181_s19 = scalar_lea.vmem %s1180_s18, 256  ;;  %p1182_p10 = scmp.lt.s32.totalorder %s1331_s22, %s1180_s18 }
  0x1c   : > { %p1177_p13 = pnand %p1175_p11, %p1161_p12  ;;  %p1183_p1 = scmp.lt.s32.totalorder %s1181_s19, %s1174_s15 }
  0x1e   : > { %p1178_p9 = pneg %p1177_p13  ;;  %p1184_p2 = por %p1183_p1, %p1182_p10 }
  0x20   : > { %p1185_p3 = pnand %p1184_p2, %p1178_p9 }
  0x22   : > { %1188 = shalt.err (!%p1185_p3)
}
  0x23   : > { %1108 = dma.hbm_to_vmem [thread:$0]  (!%p1333_p8), %s1329_s20, 128, %s1331_s22, %s262_s24  }
  0x24   : > { %p1762_p0 = scmp.lt.s32.totalorder %s1223_s30, 3  ;;  %p1763_p4 = scmp.ge.s32.totalorder %s1223_s30, 1 }
  0x26   : > { %p287_p12 = pnand %p1763_p4, %p1762_p0 }
  0x27   : > { %s292_s21 = sand.u32 (!%p287_p12), 1, %s1215_s28   ;;  %v347_v0 = vlaneseq (!%p287_p12) }
  0x28   : > { %290 = sbr.rel (%p287_p12) target bundleno = 1394 (0x572), region = 52  ;;  %s1369_s25 = sshll.u32 (!%p287_p12), %s292_s21, 3 }
  0x29   : > { %s293_s26 = scalar_lea.sflag (!%p287_p12), [#allocation3], %s292_s21  ;;  %s296_s27 = scalar_lea.vmem (!%p287_p12), [#allocation2], %s1369_s25 }
  0x2f   : > { %1206 = dma.done.wait (%p1320_p7), %s293_s26, 128  }
  0x30   : > { %1208 = vsyncadd (%p1320_p7), %s293_s26, 4294967168  ;;  %v1226_v1 = vmov 0   ;;  %v348_v2 = vand.u32 127, %v347_v0  ;;  %v381_v3 = vshrl.u32 %v347_v0, 7  ;;  %p334_p8 = scmp.lt.s32.totalorder %s1303_s9, 1  ;;  %s1227_s30 = smov 113  }
  0x31   : > { %689 = vmatprep.mubr.bf16.mxu0 %v1226_v1  ;;  %1155 = vset.pattern.permute.xlu0 %v1226_v1  ;;  %s1228_s20 = smov 127   ;;  %v357_v16 = vld [vmem:[%s296_s27] sm:$0xff]  ;;  %s1229_s11 = smov 1   ;;  %vm364_vm6 = vcmask 1043456   ;;  %v1415_v25 = vrot.slane %v1226_v1, 4  ;;  %vm412_vm7 = vcmask 924672  }
  0x32   : > { %925 = vmatprep.mubr.bf16.mxu1 %v1226_v1  ;;  %1156 = vset.pattern.permute.xlu1 %v1226_v1  ;;  %v349_v4 = vadd.s32 128, %v348_v2  ;;  %v350_v5 = vand.u32 15, %v348_v2  ;;  %v382_v7 = vsub.s32 0, %v381_v3  ;;  %v386_v8 = vsub.s32 4, %v381_v3  ;;  %s1779_s9 = smov (!%p334_p8, %s1303_s9), 1  ;;  %s1230_s12 = smov 15  }
  0x33   : > { %s1101_s14 = sshll.u32 %s1779_s9, 3  ;;  %v362_v18 = vcombine.low %v357_v16, %v357_v16  ;;  %s1231_s16 = smov 17   ;;  %vm432_vm10 = vcmask 7168   ;;  %vm1754_vm11 = vcmask 1039360   ;;  %vm442_vm12 = vcmask 121856  }
  0x34   : > { %v351_v6 = vand.u32 15, %v349_v4  ;;  %vm354_vm0 = vcmp.le.s32.totalorder %v350_v5, 14  ;;  %vm352_vm1 = vcmp.ge.s32.totalorder %v350_v5, 1  ;;  %s338_s24 = scalar_lea.vmem %s1745_s1, %s1101_s14  ;;  %s1232_s15 = smov 111  }
  0x35   : > { %v356_v15 = vld [vmem:[%s338_s24] sm:$0xff]  ;;  %s1233_s17 = smov 126   ;;  %s1234_s18 = smov 112  }
  0x36   : > { %vm355_vm2 = vcmp.le.s32.totalorder %v351_v6, 14  ;;  %vm353_vm3 = vcmp.ge.s32.totalorder %v351_v6, 1  ;;  %v359_v17 = vcombine.high %v356_v15, %v356_v15  ;;  %v365_v20 = vsel %vm364_vm6, %v356_v15, %v362_v18  ;;  %s1235_s19 = smov 110   ;;  %s1236_s21 = smov 96  }
  0x37   : > { %vm398_vm4 = vmpackc.low %vm355_vm2, %vm354_vm0  ;;  %v1402_v22 = vpack.c.bf16 %v365_v20, %v365_v20  ;;  %s1237_s25 = smov 95   ;;  %s1238_s26 = smov 94  }
  0x38   : > { %v399_v9 = vsel %vm398_vm4, 65537, %v1226_v1  ;;  %vm378_vm5 = vmpackc.low %vm353_vm3, %vm352_vm1  ;;  %v366_v19 = vsel %vm364_vm6, %v359_v17, %v357_v16  ;;  %vm452_vm3 = vcmask 138240  }
  0x39   : > { %v403_v10 = vrot.slane %v399_v9, %v382_v7  ;;  %v379_v11 = vsel %vm378_vm5, 65537, %v1226_v1  ;;  %v407_v13 = vrot.slane %v399_v9, %v386_v8  ;;  %v1399_v21 = vpack.c.bf16 %v366_v19, %v366_v19 }
  0x3a   : > { %v383_v12 = vrot.slane %v379_v11, %v382_v7  ;;  %v387_v14 = vrot.slane %v379_v11, %v386_v8  ;;  %v462_v24 = vrot.slane %v1402_v22, 4  ;;  %vm392_vm5 = vcmask 908288  }
  0x3b   : > { %408 = vrot.lane.b32.xlu1 %v403_v10, %s1227_s30  ;;  %v463_v23 = vrot.slane %v1399_v21, 4 }
  0x3c   : > { %418 = vrot.lane.b32.xlu0 %v383_v12, %s1228_s20 }
  0x3f   : > { %410 = vrot.lane.b32.xlu1 %v407_v13, %s1227_s30 }
  0x40   : > { %420 = vrot.lane.b32.xlu0 %v387_v14, %s1228_s20 }
  0x43   : > { %430 = vrot.lane.b32.xlu1 %v407_v13, %s1229_s11 }
  0x44   : > { %428 = vrot.lane.b32.xlu0 %v403_v10, %s1229_s11 }
  0x47   : > { %440 = vrot.lane.b32.xlu1 %v387_v14, %s1230_s12 }
  0x48   : > { %438 = vrot.lane.b32.xlu0 %v383_v12, %s1230_s12 }
  0x4b   : > { %450 = vrot.lane.b32.xlu1 %v407_v13, %s1231_s16 }
  0x4c   : > { %448 = vrot.lane.b32.xlu0 %v403_v10, %s1231_s16 }
  0x4f   : > { %390 = vrot.lane.b32.xlu1 %v387_v14, %s1232_s15 }
  0x50   : > { %388 = vrot.lane.b32.xlu0 %v383_v12, %s1232_s15 }
  0x53   : > { %468 = vrot.lane.b32.xlu1 %v463_v23, %s1228_s20 }
  0x54   : > { %466 = vrot.lane.b32.xlu0 %v462_v24, %s1228_s20 }
  0x57   : > { %474 = vrot.lane.b32.xlu1 %v1226_v1, %s1233_s17 }
  0x58   : > { %464 = vrot.lane.b32.xlu0 %v1415_v25, %s1228_s20 }
  0x5b   : > { %496 = vrot.lane.b32.xlu1 %v1402_v22, %s1232_s15 }
  0x5c   : > { %487 = vrot.lane.b32.xlu0 %v1415_v25, %s1234_s18 }
  0x5f   : > { %509 = vrot.lane.b32.xlu1 %v1415_v25, %s1235_s19 }
  0x60   : > { %498 = vrot.lane.b32.xlu0 %v1399_v21, %s1232_s15 }
  0x64   : > { %520 = vrot.lane.b32.xlu0 %v1226_v1, %s1236_s21 }
  0xad   : > { %v409_v26 = vpop.permute.xlu1 %408 }
  0xae   : > { %v419_v27 = vpop.permute.xlu0 %418 }
  0xb1   : > { %v1431_v28 = vpop.permute.xlu1 %410 }
  0xb2   : > { %v1434_v29 = vsel %vm412_vm7, %v409_v26, %v1431_v28  ;;  %vm415_vm8 = vcmp.ne.s16.totalorder %v1431_v28, 0  ;;  %v1437_v30 = vpop.permute.xlu0 %420 }
  0xb3   : > { %vm414_vm9 = vcmp.ne.s16.totalorder %v1434_v29, 0  ;;  %v417_v31 = vsel %vm415_vm8, %v1399_v21, 0  ;;  %vm425_vm13 = vcmp.ne.s16.totalorder %v1437_v30, 0  ;;  %v1459_v38 = vsel %vm1754_vm11, %v419_v27, %v1437_v30 }
  0xb4   : > { %478 = vrot.lane.b32.xlu0 %v417_v31, %s1233_s17  ;;  %v416_v32 = vsel %vm414_vm9, %v1402_v22, 0  ;;  %v427_v40 = vsel %vm425_vm13, %v1399_v21, 0  ;;  %vm424_vm2 = vcmp.ne.s16.totalorder %v1459_v38, 0 }
  0xb5   : > { %v431_v33 = vpop.permute.xlu1 %430  ;;  %476 = vrot.lane.b32.xlu1 %v416_v32, %s1233_s17  ;;  %v486_v44 = vrot.slane %v427_v40, 4  ;;  %v426_v47 = vsel %vm424_vm2, %v1402_v22, 0 }
  0xb6   : > { %v1448_v34 = vpop.permute.xlu0 %428  ;;  %v485_v51 = vrot.slane %v426_v47, 4 }
  0xb7   : > { %v1452_v36 = vsel %vm432_vm10, %v1448_v34, %v431_v33  ;;  %vm434_vm14 = vcmp.ne.s16.totalorder %v1448_v34, 0 }
  0xb8   : > { %vm435_vm1 = vcmp.ne.s16.totalorder %v1452_v36, 0  ;;  %v436_v42 = vsel %vm434_vm14, %v1402_v22, 0 }
  0xb9   : > { %v441_v35 = vpop.permute.xlu1 %440  ;;  %v437_v45 = vsel %vm435_vm1, %v1399_v21, 0  ;;  %v503_v46 = vrot.slane %v436_v42, 4 }
  0xba   : > { %v1455_v37 = vpop.permute.xlu0 %438  ;;  %v504_v49 = vrot.slane %v437_v45, 4 }
  0xbb   : > { %v1462_v39 = vsel %vm442_vm12, %v1455_v37, %v441_v35  ;;  %vm444_vm15 = vcmp.ne.s16.totalorder %v1455_v37, 0 }
  0xbc   : > { %vm445_vm0 = vcmp.ne.s16.totalorder %v1462_v39, 0  ;;  %v446_v41 = vsel %vm444_vm15, %v1402_v22, 0 }
  0xbd   : > { %516 = vrot.lane.b32.xlu0 %v446_v41, %s1236_s21  ;;  %v447_v43 = vsel %vm445_vm0, %v1399_v21, 0  ;;  %v451_v50 = vpop.permute.xlu1 %450 }
  0xbe   : > { %518 = vrot.lane.b32.xlu1 %v447_v43, %s1236_s21  ;;  %v1489_v48 = vpop.permute.xlu0 %448 }
  0xbf   : > { %vm1757_vm4 = vcmp.ne.s16.totalorder %v1489_v48, 0  ;;  %v1502_v54 = vsel %vm452_vm3, %v1489_v48, %v451_v50 }
  0xc0   : > { %v456_v55 = vsel %vm1757_vm4, %v1402_v22, 0  ;;  %vm1756_vm7 = vcmp.ne.s16.totalorder %v1502_v54, 0  ;;  %vm511_vm4 = vcmask 900096  }
  0xc1   : > { %491 = vrot.lane.b32.xlu0 %v486_v44, %s1234_s18  ;;  %v1495_v53 = vpop.permute.xlu1 %390  ;;  %v457_v59 = vsel %vm1756_vm7, %v1399_v21, 0  ;;  %vm480_vm7 = vcmask 1031168  }
  0xc2   : > { %505 = vrot.lane.b32.xlu1 %v503_v46, %s1235_s19  ;;  %v389_v52 = vpop.permute.xlu0 %388  ;;  %vm1755_vm10 = vcmp.ne.s16.totalorder %v1495_v53, 0 }
  0xc3   : > { %v1512_v56 = vsel %vm392_vm5, %v389_v52, %v1495_v53  ;;  %v397_v60 = vsel %vm1755_vm10, %v1399_v21, 0  ;;  %vm493_vm10 = vcmask 916480  }
  0xc4   : > { %vm1753_vm12 = vcmp.ne.s16.totalorder %v1512_v56, 0 }
  0xc5   : > { %507 = vrot.lane.b32.xlu0 %v504_v49, %s1235_s19  ;;  %v469_v58 = vpop.permute.xlu1 %468  ;;  %v396_v61 = vsel %vm1753_vm12, %v1402_v22, 0  ;;  %vm522_vm12 = vcmask 785408  }
  0xc6   : > { %489 = vrot.lane.b32.xlu1 %v485_v51, %s1234_s18  ;;  %v467_v57 = vpop.permute.xlu0 %466  ;;  %v553_v0 = vsel %vm364_vm6, %v397_v60, %v469_v58 }
  0xc7   : > { %v471_v62 = vsel %vm1754_vm11, %v467_v57, %v469_v58 }
  0xc8   : > { %v550_v2 = vsel %vm364_vm6, %v396_v61, %v471_v62 }
  0xc9   : > { %527 = vrot.lane.b32.xlu0 %v463_v23, %s1237_s25  ;;  %v475_v6 = vpop.permute.xlu1 %474 }
  0xca   : > { %525 = vrot.lane.b32.xlu1 %v462_v24, %s1237_s25  ;;  %v465_v63 = vpop.permute.xlu0 %464 }
  0xcb   : > { %v470_v3 = vsel %vm1754_vm11, %v465_v63, %v467_v57  ;;  %vm1758_vm11 = vcmask 777216  }
  0xcc   : > { %v547_v4 = vsel %vm364_vm6, 0, %v470_v3  ;;  %v717_v3 = vrot.slane %v1226_v1, 6 }
  0xcd   : > { %536 = vrot.lane.b32.xlu0 %v456_v55, %s1238_s26  ;;  %v497_v8 = vpop.permute.xlu1 %496 }
  0xce   : > { %529 = vrot.lane.b32.xlu1 %v1415_v25, %s1237_s25  ;;  %v488_v5 = vpop.permute.xlu0 %487 }
  0xd1   : > { %540 = vrot.lane.b32.xlu0 %v1226_v1, %s1238_s26  ;;  %v510_v10 = vpop.permute.xlu1 %509 }
  0xd2   : > { %538 = vrot.lane.b32.xlu1 %v457_v59, %s1238_s26  ;;  %v499_v7 = vpop.permute.xlu0 %498 }
  0xd3   : > { %v500_v47 = vsel %vm392_vm5, %v497_v8, %v499_v7 }
  0xd5   : > { %603 = vrot.lane.b32.xlu0 %v553_v0, %s1231_s16 }
  0xd6   : > { %601 = vrot.lane.b32.xlu1 %v550_v2, %s1231_s16  ;;  %v521_v9 = vpop.permute.xlu0 %520  ;;  %v581_v2 = vld [vmem:[%s1747_s3] sm:$0xf] }
  0xda   : > { %599 = vrot.lane.b32.xlu1 %v547_v4, %s1231_s16  ;;  %v1588_v4 = vrot.slane %v1226_v1, 2 }
 0x126   : > { %v479_v11 = vpop.permute.xlu0 %478 }
 0x127   : > { %v477_v12 = vpop.permute.xlu1 %476 }
 0x128   : > { %v482_v33 = vsel %vm480_vm7, %v477_v12, %v479_v11  ;;  %v481_v49 = vsel %vm480_vm7, %v475_v6, %v477_v12 }
 0x12f   : > { %v517_v13 = vpop.permute.xlu0 %516 }
 0x130   : > { %v519_v14 = vpop.permute.xlu1 %518 }
 0x131   : > { %v523_v23 = vsel %vm522_vm12, %v517_v13, %v519_v14  ;;  %v524_v35 = vsel %vm522_vm12, %v519_v14, %v521_v9 }
 0x133   : > { %v492_v15 = vpop.permute.xlu0 %491 }
 0x134   : > { %v506_v16 = vpop.permute.xlu1 %505  ;;  %v562_v17 = vsel %vm364_vm6, %v479_v11, %v492_v15 }
 0x135   : > { %609 = vrot.lane.b32.xlu1 %v562_v17, %s1231_s16  ;;  %v565_v20 = vsel %vm364_vm6, %v497_v8, %v506_v16 }
 0x137   : > { %v508_v18 = vpop.permute.xlu0 %507 }
 0x138   : > { %v490_v19 = vpop.permute.xlu1 %489  ;;  %v512_v43 = vsel %vm511_vm4, %v506_v16, %v508_v18  ;;  %v513_v52 = vsel %vm511_vm4, %v508_v18, %v510_v10 }
 0x139   : > { %611 = vrot.lane.b32.xlu1 %v565_v20, %s1231_s16  ;;  %v495_v27 = vsel %vm493_vm10, %v490_v19, %v492_v15  ;;  %v494_v44 = vsel %vm493_vm10, %v488_v5, %v490_v19  ;;  %v568_v50 = vsel %vm364_vm6, %v500_v47, %v512_v43  ;;  %v571_v59 = vsel %vm364_vm6, %v499_v7, %v513_v52 }
 0x13a   : > { %v559_v42 = vsel %vm364_vm6, %v482_v33, %v495_v27  ;;  %v556_v51 = vsel %vm364_vm6, %v481_v49, %v494_v44 }
 0x13b   : > { %v528_v21 = vpop.permute.xlu0 %527 }
 0x13c   : > { %v526_v22 = vpop.permute.xlu1 %525 }
 0x13d   : > { %v532_v24 = vsel %vm1758_vm11, %v526_v22, %v528_v21  ;;  %v574_v63 = vsel %vm364_vm6, %v517_v13, %v526_v22 }
 0x13e   : > { %v577_v26 = vsel %vm364_vm6, %v523_v23, %v532_v24 }
 0x13f   : > { %619 = vrot.lane.b32.xlu0 %v577_v26, %s1231_s16  ;;  %v537_v31 = vpop.permute.xlu0 %536  ;;  %v369_v26 = vld [vmem:[%s1746_s2] sm:$0x3] }
 0x140   : > { %v530_v32 = vpop.permute.xlu1 %529 }
 0x141   : > { %v533_v40 = vsel %vm1758_vm11, %v528_v21, %v530_v32  ;;  %vm1759_vm11 = vcmask 769024  }
 0x142   : > { %v580_v41 = vsel %vm364_vm6, %v524_v35, %v533_v40 }
 0x143   : > { %621 = vrot.lane.b32.xlu1 %v580_v41, %s1231_s16  ;;  %607 = vrot.lane.b32.xlu0 %v559_v42, %s1231_s16  ;;  %v1558_v45 = vpop.permute.xlu0 %540 }
 0x144   : > { %v539_v46 = vpop.permute.xlu1 %538 }
 0x145   : > { %v544_v60 = vsel %vm1759_vm11, %v539_v46, %v1558_v45  ;;  %v543_v0 = vsel %vm1759_vm11, %v537_v31, %v539_v46  ;;  %vm647_vm11 = vcmask 588800  }
 0x147   : > { %613 = vrot.lane.b32.xlu1 %v568_v50, %s1231_s16  ;;  %605 = vrot.lane.b32.xlu0 %v556_v51, %s1231_s16  ;;  %v604_v55 = vpop.permute.xlu0 %603 }
 0x148   : > { %v602_v57 = vpop.permute.xlu1 %601 }
 0x149   : > { %v630_v58 = vsel %vm452_vm3, %v602_v57, %v604_v55 }
 0x14a   : > { %657 = vmatprep.subr.bf16.mxu0 %v630_v58 }
 0x14b   : > { %615 = vrot.lane.b32.xlu0 %v571_v59, %s1231_s16  ;;  %623 = vrot.lane.b32.xlu1 %v537_v31, %s1231_s16 }
 0x14c   : > { %v600_v61 = vpop.permute.xlu1 %599 }
 0x14d   : > { %v629_v62 = vsel %vm452_vm3, %v600_v61, %v602_v57 }
 0x14e   : > { %658 = vmatpush1.bf16.msra.mxu0 %v629_v62 }
 0x14f   : > { %617 = vrot.lane.b32.xlu0 %v574_v63, %s1231_s16  ;;  %627 = vrot.lane.b32.xlu1 %v544_v60, %s1231_s16 }
 0x153   : > { %625 = vrot.lane.b32.xlu0 %v543_v0, %s1231_s16  ;;  %732 = vrot.lane.b32.xlu1 %v1415_v25, %s1233_s17 }
 0x157   : > { %584 = vperm.xlu0 %1155, %v581_v2   ;;  %766 = vrot.lane.b32.xlu1 %v717_v3, %s1235_s19 }
 0x15b   : > { %720 = vrot.lane.b32.xlu0 %v717_v3, %s1228_s20 }
 0x15f   : > { %745 = vrot.lane.b32.xlu0 %v1588_v4, %s1234_s18 }
 0x163   : > { %778 = vrot.lane.b32.xlu0 %v1415_v25, %s1236_s21 }
 0x1a7   : > { %v610_v5 = vpop.permute.xlu1 %609 }
 0x1ab   : > { %v612_v6 = vpop.permute.xlu1 %611 }
 0x1b1   : > { %v620_v7 = vpop.permute.xlu0 %619 }
 0x1b5   : > { %v622_v8 = vpop.permute.xlu1 %621  ;;  %v608_v9 = vpop.permute.xlu0 %607 }
 0x1b6   : > { %v632_v10 = vsel %vm452_vm3, %v608_v9, %v610_v5  ;;  %v636_v17 = vsel %vm452_vm3, %v620_v7, %v622_v8 }
 0x1b7   : > { %659 = vmatprep.subr.bf16.mxu0 %v632_v10 }
 0x1b9   : > { %v614_v11 = vpop.permute.xlu1 %613  ;;  %v606_v12 = vpop.permute.xlu0 %605 }
 0x1ba   : > { %v631_v13 = vsel %vm452_vm3, %v606_v12, %v608_v9  ;;  %v633_v25 = vsel %vm452_vm3, %v612_v6, %v614_v11 }
 0x1bb   : > { %660 = vmatpush1.bf16.msra.mxu0 %v631_v13 }
 0x1bd   : > { %v616_v14 = vpop.permute.xlu0 %615  ;;  %v624_v16 = vpop.permute.xlu1 %623 }
 0x1be   : > { %v634_v15 = vsel %vm452_vm3, %v614_v11, %v616_v14 }
 0x1bf   : > { %661 = vmatprep.subr.bf16.mxu0 %v634_v15 }
 0x1c0   : > { %662 = vmatpush1.bf16.msra.mxu0 %v633_v25 }
 0x1c1   : > { %663 = vmatprep.subr.bf16.mxu0 %v636_v17  ;;  %v618_v18 = vpop.permute.xlu0 %617  ;;  %v628_v20 = vpop.permute.xlu1 %627 }
 0x1c2   : > { %v635_v19 = vsel %vm452_vm3, %v618_v18, %v620_v7 }
 0x1c4   : > { %664 = vmatpush1.bf16.msra.mxu0 %v635_v19 }
 0x1c5   : > { %v626_v21 = vpop.permute.xlu0 %625  ;;  %v733_v3 = vpop.permute.xlu1 %732 }
 0x1c6   : > { %v637_v22 = vsel %vm452_vm3, %v624_v16, %v626_v21  ;;  %v638_v23 = vsel %vm452_vm3, %v626_v21, %v628_v20 }
 0x1c7   : > { %1092 = vmatprep.subr.msk.bf16.mxu0 %vm364_vm6, %v638_v23  ;;  %v652_v24 = vsel %vm364_vm6, %v637_v22, 0 }
 0x1c8   : > { %666 = vmatpush1.bf16.msra.mxu0 %v652_v24 }
 0x1c9   : > { %v767_v6 = vpop.permute.xlu1 %766 }
 0x1cb   : > { %1093 = vmatmul.mubr.msk.bf16.vlgmr.msra.gmra.mrb[0].mxu0 %vm647_vm11, %v369_v26  ;;  %vm800_vm11 = vcmask 1041408  }
 0x1d6   : > { %v585_v27 = vpop.permute.xlu0 %584 }
 0x1da   : > { %v721_v39 = vpop.permute.xlu0 %720 }
 0x1de   : > { %v746_v5 = vpop.permute.xlu0 %745 }
 0x1e2   : > { %v779_v7 = vpop.permute.xlu0 %778 }
 0x29e   : > { %v691_v31 = vpop.f32.mrb[0].mxu0 }
 0x29f   : > { %v692_v32 = vadd.f32 %v691_v31, %v585_v27  ;;  %v693_v33 = vpop.f32.mrb[1].mxu0 }
 0x2a0   : > { %v694_v35 = vadd.f32 %v693_v33, %v585_v27  ;;  %v695_v40 = vpop.f32.mrb[2].mxu0 }
 0x2a1   : > { %v698_v41 = vmax.f32 %v692_v32, 0.0  ;;  %v696_v42 = vpop.f32.mrb[3].mxu0 }
 0x2a2   : > { %v699_v43 = vmax.f32 %v694_v35, 0.0 }
 0x2a3   : > { %v1607_v44 = vpack.c.bf16 %v698_v41, %v698_v41 }
 0x2a4   : > { %v702_v46 = vpack.c.bf16 %v699_v43, %v699_v43 }
 0x2a5   : > { %753 = vrot.lane.b32.xlu1 %v1607_v44, %s1232_s15  ;;  %v707_v47 = vsel %vm424_vm2, %v1607_v44, 0  ;;  %v718_v49 = vrot.slane %v1607_v44, 6  ;;  %v711_v51 = vsel %vm444_vm15, %v1607_v44, 0  ;;  %v782_v52 = vrot.slane %v1607_v44, 2 }
 0x2a6   : > { %755 = vrot.lane.b32.xlu0 %v702_v46, %s1232_s15  ;;  %v743_v50 = vrot.slane %v707_v47, 2  ;;  %v772_v55 = vrot.slane %v711_v51, 4  ;;  %v706_v38 = vsel %vm415_vm8, %v702_v46, 0  ;;  %v719_v57 = vrot.slane %v702_v46, 6 }
 0x2a7   : > { %v731_v58 = vrot.slane %v706_v38, 4  ;;  %v705_v59 = vsel %vm414_vm9, %v1607_v44, 0  ;;  %v710_v37 = vsel %vm435_vm1, %v702_v46, 0  ;;  %v709_v28 = vsel %vm434_vm14, %v1607_v44, 0 }
 0x2a8   : > { %v730_v60 = vrot.slane %v705_v59, 4  ;;  %v761_v61 = vrot.slane %v710_v37, 6  ;;  %v760_v62 = vrot.slane %v709_v28, 6  ;;  %v783_v29 = vrot.slane %v702_v46, 2 }
 0x2a9   : > { %722 = vrot.lane.b32.xlu1 %v718_v49, %s1228_s20  ;;  %v708_v63 = vsel %vm425_vm13, %v702_v46, 0  ;;  %v712_v0 = vsel %vm445_vm0, %v702_v46, 0  ;;  %vm1764_vm8 = vcmp.ne.s16.totalorder %v1489_v48, 0  ;;  %vm1765_vm9 = vcmp.ne.s16.totalorder %v1502_v54, 0 }
 0x2aa   : > { %747 = vrot.lane.b32.xlu0 %v743_v50, %s1234_s18  ;;  %v744_v36 = vrot.slane %v708_v63, 2  ;;  %v713_v34 = vsel %vm1764_vm8, %v1607_v44, 0  ;;  %v773_v2 = vrot.slane %v712_v0, 4  ;;  %v714_v30 = vsel %vm1765_vm9, %v702_v46, 0  ;;  %v843_v0 = vld [vmem:[%s1749_s5] sm:$0xf] }
 0x2ab   : > { %vm1766_vm13 = vcmp.ne.s16.totalorder %v1495_v53, 0  ;;  %vm1767_vm14 = vcmask 1039360   ;;  %vm815_vm15 = vcmask 1045504   ;;  %vm1769_vm1 = vcmp.ne.s16.totalorder %v1512_v56, 0 }
 0x2ac   : > { %v704_v54 = vsel %vm1766_vm13, %v702_v46, 0  ;;  %vm1768_vm0 = vmmov %vm1767_vm14  ;;  %v703_v49 = vsel %vm1769_vm1, %v1607_v44, 0  ;;  %vm1770_vm2 = vcmask 777216  }
 0x2ad   : > { %784 = vrot.lane.b32.xlu1 %v782_v52, %s1237_s25 }
 0x2ae   : > { %774 = vrot.lane.b32.xlu0 %v772_v55, %s1236_s21 }
 0x2b1   : > { %724 = vrot.lane.b32.xlu1 %v719_v57, %s1228_s20 }
 0x2b2   : > { %736 = vrot.lane.b32.xlu0 %v731_v58, %s1233_s17 }
 0x2b5   : > { %734 = vrot.lane.b32.xlu1 %v730_v60, %s1233_s17 }
 0x2b6   : > { %764 = vrot.lane.b32.xlu0 %v761_v61, %s1235_s19 }
 0x2b9   : > { %762 = vrot.lane.b32.xlu1 %v760_v62, %s1235_s19 }
 0x2ba   : > { %786 = vrot.lane.b32.xlu0 %v783_v29, %s1237_s25 }
 0x2bd   : > { %749 = vrot.lane.b32.xlu1 %v744_v36, %s1234_s18  ;;  %v939_v36 = vld [vmem:[%s1751_s7] sm:$0x7] }
 0x2be   : > { %794 = vrot.lane.b32.xlu0 %v713_v34, %s1238_s26 }
 0x2c1   : > { %776 = vrot.lane.b32.xlu1 %v773_v2, %s1236_s21 }
 0x2c5   : > { %788 = vrot.lane.b32.xlu1 %v1588_v4, %s1237_s25  ;;  %s343_s25 = scalar_lea.vmem %s1752_s8, %s1101_s14 }
 0x2c9   : > { %796 = vrot.lane.b32.xlu1 %v714_v30, %s1238_s26 }
 0x317   : > { %v754_v48 = vpop.permute.xlu1 %753 }
 0x318   : > { %v756_v8 = vpop.permute.xlu0 %755 }
 0x319   : > { %v757_v32 = vsel %vm392_vm5, %v754_v48, %v756_v8  ;;  %vm1771_vm5 = vmmov %vm1770_vm2 }
 0x31b   : > { %v723_v9 = vpop.permute.xlu1 %722 }
 0x31c   : > { %v748_v10 = vpop.permute.xlu0 %747  ;;  %v726_v18 = vsel %vm1767_vm14, %v721_v39, %v723_v9 }
 0x31d   : > { %v802_v23 = vsel %vm800_vm11, 0, %v726_v18  ;;  %v751_v33 = vsel %vm493_vm10, %v746_v5, %v748_v10 }
 0x31f   : > { %v785_v11 = vpop.permute.xlu1 %784 }
 0x320   : > { %v775_v12 = vpop.permute.xlu0 %774 }
 0x323   : > { %v725_v13 = vpop.permute.xlu1 %724 }
 0x324   : > { %v737_v14 = vpop.permute.xlu0 %736  ;;  %v808_v25 = vsel %vm800_vm11, %v704_v54, %v725_v13  ;;  %v727_v35 = vsel %vm1768_vm0, %v723_v9, %v725_v13 }
 0x325   : > { %v814_v21 = vsel %vm364_vm6, %v808_v25, %v737_v14  ;;  %v805_v52 = vsel %vm800_vm11, %v703_v49, %v727_v35 }
 0x327   : > { %v735_v15 = vpop.permute.xlu1 %734 }
 0x328   : > { %v765_v4 = vpop.permute.xlu0 %764  ;;  %v738_v19 = vsel %vm480_vm7, %v733_v3, %v735_v15  ;;  %v739_v40 = vsel %vm480_vm7, %v735_v15, %v737_v14  ;;  %v700_v14 = vld [vmem:[%s1748_s4] sm:$0x3] }
 0x329   : > { %v810_v31 = vsel %vm364_vm6, %v802_v23, %v738_v19  ;;  %v769_v55 = vsel %vm511_vm4, %v765_v4, %v767_v6  ;;  %v812_v58 = vsel %vm364_vm6, %v805_v52, %v739_v40 }
 0x32a   : > { %v817_v47 = vsel %vm815_vm15, %v810_v31, %v751_v33  ;;  %v830_v60 = vsel %vm800_vm11, %v756_v8, %v769_v55 }
 0x32b   : > { %v763_v16 = vpop.permute.xlu1 %762 }
 0x32c   : > { %v787_v17 = vpop.permute.xlu0 %786  ;;  %v824_v20 = vsel %vm800_vm11, %v754_v48, %v763_v16  ;;  %v768_v26 = vsel %vm511_vm4, %v763_v16, %v765_v4  ;;  %vm1772_vm4 = vcmask 769024  }
 0x32d   : > { %v832_v27 = vsel %vm364_vm6, %v824_v20, %v775_v12  ;;  %v827_v42 = vsel %vm800_vm11, %v757_v32, %v768_v26  ;;  %v790_v38 = vsel %vm1770_vm2, %v785_v11, %v787_v17  ;;  %vm1773_vm7 = vmmov %vm1772_vm4 }
 0x32e   : > { %v838_v46 = vsel %vm815_vm15, %v832_v27, %v785_v11 }
 0x32f   : > { %v750_v22 = vpop.permute.xlu1 %749 }
 0x330   : > { %v795_v24 = vpop.permute.xlu0 %794  ;;  %v821_v53 = vsel %vm815_vm15, %v814_v21, %v750_v22  ;;  %v752_v50 = vsel %vm493_vm10, %v748_v10, %v750_v22 }
 0x331   : > { %859 = vrot.lane.b32.xlu1 %v821_v53, %s1231_s16  ;;  %867 = vrot.lane.b32.xlu0 %v795_v24, %s1231_s16  ;;  %v819_v59 = vsel %vm815_vm15, %v812_v58, %v752_v50 }
 0x333   : > { %v777_v41 = vpop.permute.xlu1 %776 }
 0x334   : > { %v780_v43 = vsel %vm522_vm12, %v775_v12, %v777_v41  ;;  %v781_v56 = vsel %vm522_vm12, %v777_v41, %v779_v7 }
 0x335   : > { %861 = vrot.lane.b32.xlu1 %v838_v46, %s1231_s16  ;;  %855 = vrot.lane.b32.xlu0 %v817_v47, %s1231_s16  ;;  %v834_v51 = vsel %vm364_vm6, %v827_v42, %v780_v43  ;;  %v836_v28 = vsel %vm364_vm6, %v830_v60, %v781_v56  ;;  %vm883_vm6 = vcmask 293888  }
 0x336   : > { %v840_v44 = vsel %vm815_vm15, %v834_v51, %v790_v38 }
 0x337   : > { %v789_v57 = vpop.permute.xlu1 %788 }
 0x338   : > { %v791_v37 = vsel %vm1771_vm5, %v787_v17, %v789_v57 }
 0x339   : > { %863 = vrot.lane.b32.xlu1 %v840_v44, %s1231_s16  ;;  %857 = vrot.lane.b32.xlu0 %v819_v59, %s1231_s16  ;;  %v842_v29 = vsel %vm815_vm15, %v836_v28, %v791_v37 }
 0x33b   : > { %v797_v61 = vpop.permute.xlu1 %796 }
 0x33c   : > { %v798_v62 = vsel %vm1772_vm4, %v795_v24, %v797_v61  ;;  %v799_v63 = vsel %vm1773_vm7, %v797_v61, %v1558_v45 }
 0x33d   : > { %869 = vrot.lane.b32.xlu1 %v798_v62, %s1231_s16  ;;  %865 = vrot.lane.b32.xlu0 %v842_v29, %s1231_s16 }
 0x341   : > { %871 = vrot.lane.b32.xlu0 %v799_v63, %s1231_s16  ;;  %846 = vperm.xlu1 %1156, %v843_v0  }
 0x345   : > { %942 = vperm.xlu0 %1155, %v939_v36  }
 0x3a3   : > { %v860_v34 = vpop.permute.xlu1 %859  ;;  %v868_v2 = vpop.permute.xlu0 %867 }
 0x3a7   : > { %v862_v30 = vpop.permute.xlu1 %861  ;;  %v856_v39 = vpop.permute.xlu0 %855 }
 0x3ab   : > { %v864_v3 = vpop.permute.xlu1 %863  ;;  %v858_v5 = vpop.permute.xlu0 %857 }
 0x3ac   : > { %v874_v45 = vsel %vm452_vm3, %v858_v5, %v860_v34  ;;  %v873_v6 = vsel %vm452_vm3, %v856_v39, %v858_v5  ;;  %v875_v9 = vsel %vm452_vm3, %v862_v30, %v864_v3 }
 0x3ad   : > { %893 = vmatprep.subr.bf16.mxu1 %v874_v45 }
 0x3ae   : > { %894 = vmatpush1.bf16.msra.mxu1 %v873_v6 }
 0x3af   : > { %v870_v7 = vpop.permute.xlu1 %869  ;;  %v866_v48 = vpop.permute.xlu0 %865 }
 0x3b0   : > { %v876_v8 = vsel %vm452_vm3, %v864_v3, %v866_v48  ;;  %v877_v10 = vsel %vm452_vm3, %v868_v2, %v870_v7 }
 0x3b1   : > { %895 = vmatprep.subr.bf16.mxu1 %v876_v8  ;;  %v888_v13 = vsel %vm800_vm11, %v877_v10, 0 }
 0x3b2   : > { %896 = vmatpush1.bf16.msra.mxu1 %v875_v9 }
 0x3b3   : > { %v872_v11 = vpop.permute.xlu0 %871 }
 0x3b4   : > { %v878_v12 = vsel %vm452_vm3, %v870_v7, %v872_v11  ;;  %vm945_vm3 = vcmask 31744  }
 0x3b5   : > { %1094 = vmatprep.subr.msk.bf16.mxu1 %vm800_vm11, %v878_v12 }
 0x3b6   : > { %898 = vmatpush1.bf16.msra.mxu1 %v888_v13 }
 0x3b9   : > { %1095 = vmatmul.mubr.msk.bf16.vlgmr.msra.gmra.mrb[0].mxu1 %vm883_vm6, %v700_v14 }
 0x3ba   : > { %987 = vmatprep.mubr.bf16.mxu1 %v1226_v1  ;;  %v936_v1 = vld [vmem:[%s1750_s6] sm:$0x3] }
 0x3c0   : > { %v847_v15 = vpop.permute.xlu1 %846 }
 0x3c4   : > { %v943_v24 = vpop.permute.xlu0 %942 }
 0x48c   : > { %v927_v4 = vpop.f32.mrb[0].mxu1 }
 0x48d   : > { %v928_v54 = vadd.f32 %v927_v4, %v847_v15  ;;  %v929_v16 = vpop.f32.mrb[1].mxu1 }
 0x48e   : > { %v930_v25 = vadd.f32 %v929_v16, %v847_v15  ;;  %v931_v17 = vpop.f32.mrb[2].mxu1 }
 0x48f   : > { %v934_v18 = vmax.f32 %v928_v54, 0.0  ;;  %v932_v19 = vpop.f32.mrb[3].mxu1 }
 0x490   : > { %v935_v20 = vmax.f32 %v930_v25, 0.0 }
 0x491   : > { %v937_v21 = vpack.c.bf16 %v934_v18, %v934_v18 }
 0x492   : > { %v938_v22 = vpack.c.bf16 %v935_v20, %v935_v20 }
 0x493   : > { %v950_v23 = vsel %vm800_vm11, %v937_v21, 0 }
 0x494   : > { %1096 = vmatprep.subr.msk.bf16.mxu1 %vm800_vm11, %v938_v22 }
 0x495   : > { %956 = vmatpush1.bf16.msra.mxu1 %v950_v23 }
 0x498   : > { %1097 = vmatmul.mubr.msk.bf16.vlgmr.msra.gmra.mrb[4].mxu1 %vm945_vm3, %v936_v1 }
 0x56b   : > { %v989_v53 = vpop.f32.mrb[4].mxu1 }
 0x56c   : > { %v990_v26 = vadd.f32 %v989_v53, %v943_v24  ;;  %v991_v27 = vpop.f32.mrb[5].mxu1 }
 0x56d   : > { %v992_v31 = vadd.f32 %v991_v27, %v943_v24  ;;  %v993_v32 = vpop.f32.mrb[6].mxu1 }
 0x56e   : > { %v994_v33 = vpop.f32.mrb[7].mxu1 }
 0x56f   : > { %v998_v35 = vcombine.low %v990_v26, %v992_v31 }
 0x571   : > { %1000 = vst [vmem:[%s343_s25] sm:$0x77] %v998_v35 }
 0x572 PF: > { %p18_p7 = scmp.ge.s32.totalorder %s1306_s10, 4   ;;  %s1774_s27 = smov %s1215_s28 }
 0x573   : > { %s1775_s28 = smov %s1219_s29  ;;  %s1776_s29 = smov %s1316_s13 }
 0x574   : > { %s1777_s30 = smov %s1306_s10  ;;  %20 = sbr.rel (!%p18_p7) target bundleno = 3 (0x3), region = 95 }
 0x57b   :  { %1022 = vsyncpa [#allocation3], 1 }
 0x57c   :  { %1024 = vsyncpa [#allocation3 + $0x1], 1 }

</bundles_post_ra>
